<compile_context>
chip_gen: v6e
topology: v6e:2x2x1
jax: 0.10.0
libtpu: 0.0.40
codegen_flags: <defaults>
</compile_context>

<pallas_src>
import functools
import math

import jax
import jax.numpy as jnp
from jax.experimental import pallas as pl
from jax.experimental.pallas import tpu as pltpu


def _ocr_ptr_kernel(q_ref, k_ref, mask_ref, wq_ref, bq_ref, wk_ref, bk_ref,
                    out_ref, *, scale):
    bb, sq, h = q_ref.shape
    _, sk, _ = k_ref.shape

    # ---- linear projections: fold (block_b, seq) into the MXU M dim ---------
    q2 = q_ref[...].reshape(bb * sq, h)                       # (bb*Sq, H)
    k2 = k_ref[...].reshape(bb * sk, h)                       # (bb*Sk, H)

    q = jnp.dot(q2, wq_ref[...], preferred_element_type=jnp.float32) + bq_ref[...]
    k = jnp.dot(k2, wk_ref[...], preferred_element_type=jnp.float32) + bk_ref[...]

    # Scale the smaller tensor (q) once; cheaper than scaling the scores.
    q = (q * scale).reshape(bb, sq, -1)                       # (bb, Sq, QK)
    k = k.reshape(bb, sk, -1)                                 # (bb, Sk, QK)

    # ---- batched scores: (bb,Sq,QK) x (bb,Sk,QK) -> (bb,Sq,Sk) --------------
    scores = jnp.einsum('bqd,bkd->bqk', q, k,
                        preferred_element_type=jnp.float32)

    # ---- add (pre-unsqueezed) attention mask, broadcast over Sq -------------
    out_ref[...] = (scores + mask_ref[...]).astype(out_ref.dtype)


def _choose_block_b(batch, sq, sk, hidden, qk_size,
                    vmem_budget_bytes=48 * 1024 * 1024):
    """Largest batch block that (a) divides batch, (b) keeps >= 2 grid steps
    when batch >= 2, and (c) fits a double-buffered tile in VMEM."""
    divisors = [d for d in range(1, batch + 1) if batch % d == 0]

    def fits(d):
        # double-buffered per-step inputs/outputs + resident weights, f32
        per_step = (d * sq * hidden + d * sk * hidden + d * sk + d * sq * sk)
        resident = 2 * hidden * qk_size + 2 * qk_size
        return (2 * per_step + resident) * 4 <= vmem_budget_bytes

    candidates = [d for d in divisors if fits(d)]
    if not candidates:
        return 1
    if batch >= 2:
        # prefer >= 2 grid steps for megacore / multi-TC sharding
        par = [d for d in candidates if batch // d >= 2]
        if par:
            return par[-1]
    return candidates[-1]


def ocr_ptr_net(query_inputs, key_inputs, attention_mask, params, *,
                block_b=None):
    """JAX/Pallas equivalent of OcrPtrNet.forward."""
    squeeze_result = query_inputs.ndim == 2
    if squeeze_result:
        query_inputs = query_inputs[:, None, :]

    query_inputs = query_inputs.astype(jnp.float32)
    key_inputs = key_inputs.astype(jnp.float32)
    mask = attention_mask.astype(jnp.float32)

    batch, sq, hidden = query_inputs.shape
    _, sk, _ = key_inputs.shape
    qk_size = params["wq"].shape[0]

    # torch Linear stores (out, in); transpose so the kernel computes x @ W.
    wq_t = params["wq"].T.astype(jnp.float32)                 # (H, QK)
    wk_t = params["wk"].T.astype(jnp.float32)                 # (H, QK)
    bq = params["bq"].reshape(1, qk_size).astype(jnp.float32)
    bk = params["bk"].reshape(1, qk_size).astype(jnp.float32)
    mask3 = mask.reshape(batch, 1, sk)                        # (B, 1, Sk)

    if block_b is None:
        block_b = _choose_block_b(batch, sq, sk, hidden, qk_size)
    block_b = max(1, min(block_b, batch))
    while batch % block_b:
        block_b -= 1
    grid = (batch // block_b,)

    kernel = functools.partial(_ocr_ptr_kernel, scale=1.0 / math.sqrt(qk_size))

    grid_spec = pltpu.PrefetchScalarGridSpec(
        num_scalar_prefetch=0,
        grid=grid,
        in_specs=[
            pl.BlockSpec((block_b, sq, hidden), lambda b: (b, 0, 0)),   # query
            pl.BlockSpec((block_b, sk, hidden), lambda b: (b, 0, 0)),   # key
            pl.BlockSpec((block_b, 1, sk), lambda b: (b, 0, 0)),        # mask
            pl.BlockSpec((hidden, qk_size), lambda b: (0, 0)),          # Wq^T (resident)
            pl.BlockSpec((1, qk_size), lambda b: (0, 0)),               # bq   (resident)
            pl.BlockSpec((hidden, qk_size), lambda b: (0, 0)),          # Wk^T (resident)
            pl.BlockSpec((1, qk_size), lambda b: (0, 0)),               # bk   (resident)
        ],
        out_specs=pl.BlockSpec((block_b, sq, sk), lambda b: (b, 0, 0)),
    )

    out = pl.pallas_call(
        kernel,
        out_shape=jax.ShapeDtypeStruct((batch, sq, sk), jnp.float32),
        grid_spec=grid_spec,
        compiler_params=pltpu.CompilerParams(
            dimension_semantics=("parallel",)),
    )(query_inputs, key_inputs, mask3, wq_t, bq, wk_t, bk)

    if squeeze_result:
        out = out[:, 0, :]
    return out


# ------------------------- pure-JAX reference --------------------------------
def _reference(query_inputs, key_inputs, attention_mask, params):
    squeeze_result = query_inputs.ndim == 2
    if squeeze_result:
        query_inputs = query_inputs[:, None, :]
    qk_size = params["wq"].shape[0]
    q = query_inputs @ params["wq"].T + params["bq"]
    k = key_inputs @ params["wk"].T + params["bk"]
    scores = jnp.einsum('bqd,bkd->bqk', q, k) / math.sqrt(qk_size)
    scores = scores + attention_mask[:, None, :]
    if squeeze_result:
        scores = scores[:, 0, :]
    return scores


if __name__ == "__main__":
    # Sk = 128 keeps the output last dim lane-dense (unmasked vector stores).
    B, SQ, SK, H, QK = 4, 8, 128, 64, 64

    key = jax.random.PRNGKey(0)
    k = jax.random.split(key, 8)

    query_inputs = jax.random.normal(k[0], (B, SQ, H), jnp.float32)
    key_inputs = jax.random.normal(k[1], (B, SK, H), jnp.float32)
    # BERT-style additive mask: 0 for valid positions, -1e4 for padded ones.
    valid = jax.random.bernoulli(k[2], 0.8, (B, SK))
    attention_mask = jnp.where(valid, 0.0, -1e4).astype(jnp.float32)

    params = {
        "wq": 0.05 * jax.random.normal(k[3], (QK, H), jnp.float32),
        "bq": 0.01 * jax.random.normal(k[4], (QK,), jnp.float32),
        "wk": 0.05 * jax.random.normal(k[5], (QK, H), jnp.float32),
        "bk": 0.01 * jax.random.normal(k[6], (QK,), jnp.float32),
    }

    # 3-D query path (auto block_b -> 2 parallel grid steps for B=4).
    out = ocr_ptr_net(query_inputs, key_inputs, attention_mask, params)
    out = jax.block_until_ready(out)
    ref = _reference(query_inputs, key_inputs, attention_mask, params)
    assert out.shape == (B, SQ, SK)
    err = jnp.max(jnp.abs(out - ref) / (1.0 + jnp.abs(ref)))
    assert err < 1e-3, f"3-D path mismatch vs reference: {err}"

    # 2-D query path (decode-style single query; output squeezed).
    query_2d = jax.random.normal(k[7], (B, H), jnp.float32)
    out2 = ocr_ptr_net(query_2d, key_inputs, attention_mask, params)
    out2 = jax.block_until_ready(out2)
    ref2 = _reference(query_2d, key_inputs, attention_mask, params)
    assert out2.shape == (B, SK)
    err2 = jnp.max(jnp.abs(out2 - ref2) / (1.0 + jnp.abs(ref2)))
    assert err2 < 1e-3, f"2-D path mismatch vs reference: {err2}"

    print("KERNEL_OK")
</pallas_src>

<mosaic_0001>
module attributes {stable_mosaic.version = 11 : i64} {
  func.func @_ocr_ptr_kernel(%arg0: i32, %arg1: memref<2x8x64xf32, #tpu.memory_space<vmem>>, %arg2: memref<2x128x64xf32, #tpu.memory_space<vmem>>, %arg3: memref<2x1x128xf32, #tpu.memory_space<vmem>>, %arg4: memref<64x64xf32, #tpu.memory_space<vmem>>, %arg5: memref<1x64xf32, #tpu.memory_space<vmem>>, %arg6: memref<64x64xf32, #tpu.memory_space<vmem>>, %arg7: memref<1x64xf32, #tpu.memory_space<vmem>>, %arg8: memref<2x8x128xf32, #tpu.memory_space<vmem>>) attributes {dimension_semantics = [#tpu.dimension_semantics<parallel>], iteration_bounds = array<i64: 2>, scalar_prefetch = 0 : i64, scratch_operands = 0 : i64, tpu.core_type = #tpu.core_type<tc>, window_params = [{transform_indices = @transform_0, window_bounds = array<i64: 2, 8, 64>}, {transform_indices = @transform_1, window_bounds = array<i64: 2, 128, 64>}, {transform_indices = @transform_2, window_bounds = array<i64: 2, 1, 128>}, {pipeline_mode = #tpu.pipeline_mode<synchronous>, transform_indices = @transform_3, window_bounds = array<i64: 64, 64>}, {pipeline_mode = #tpu.pipeline_mode<synchronous>, transform_indices = @transform_4, window_bounds = array<i64: 1, 64>}, {pipeline_mode = #tpu.pipeline_mode<synchronous>, transform_indices = @transform_5, window_bounds = array<i64: 64, 64>}, {pipeline_mode = #tpu.pipeline_mode<synchronous>, transform_indices = @transform_6, window_bounds = array<i64: 1, 64>}, {transform_indices = @transform_7, window_bounds = array<i64: 2, 8, 128>}]} {
    %c0 = arith.constant 0 : index
    %c0_0 = arith.constant 0 : index
    %c0_1 = arith.constant 0 : index
    %0 = vector.load %arg1[%c0, %c0_0, %c0_1] : memref<2x8x64xf32, #tpu.memory_space<vmem>>, vector<2x8x64xf32>
    %1 = vector.shape_cast %0 : vector<2x8x64xf32> to vector<16x64xf32>
    %c0_2 = arith.constant 0 : index
    %c0_3 = arith.constant 0 : index
    %c0_4 = arith.constant 0 : index
    %2 = vector.load %arg2[%c0_2, %c0_3, %c0_4] : memref<2x128x64xf32, #tpu.memory_space<vmem>>, vector<2x128x64xf32>
    %3 = vector.shape_cast %2 : vector<2x128x64xf32> to vector<256x64xf32>
    %c0_5 = arith.constant 0 : index
    %c0_6 = arith.constant 0 : index
    %4 = vector.load %arg4[%c0_5, %c0_6] : memref<64x64xf32, #tpu.memory_space<vmem>>, vector<64x64xf32>
    %cst = arith.constant dense<0.000000e+00> : vector<16x64xf32>
    %5 = tpu.matmul %1, %4, %cst {dimension_numbers = #tpu.dot_dimension_numbers<[1], [0], [0], [1], [0, 0, 1, 1], [], []>} : vector<16x64xf32>, vector<64x64xf32>, vector<16x64xf32> -> vector<16x64xf32>
    %c0_7 = arith.constant 0 : index
    %c0_8 = arith.constant 0 : index
    %6 = vector.load %arg5[%c0_7, %c0_8] : memref<1x64xf32, #tpu.memory_space<vmem>>, vector<1x64xf32>
    %7 = vector.broadcast %6 : vector<1x64xf32> to vector<16x64xf32>
    %8 = arith.addf %5, %7 : vector<16x64xf32>
    %c0_9 = arith.constant 0 : index
    %c0_10 = arith.constant 0 : index
    %9 = vector.load %arg6[%c0_9, %c0_10] : memref<64x64xf32, #tpu.memory_space<vmem>>, vector<64x64xf32>
    %cst_11 = arith.constant dense<0.000000e+00> : vector<256x64xf32>
    %10 = tpu.matmul %3, %9, %cst_11 {dimension_numbers = #tpu.dot_dimension_numbers<[1], [0], [0], [1], [0, 0, 1, 1], [], []>} : vector<256x64xf32>, vector<64x64xf32>, vector<256x64xf32> -> vector<256x64xf32>
    %c0_12 = arith.constant 0 : index
    %c0_13 = arith.constant 0 : index
    %11 = vector.load %arg7[%c0_12, %c0_13] : memref<1x64xf32, #tpu.memory_space<vmem>>, vector<1x64xf32>
    %12 = vector.broadcast %11 : vector<1x64xf32> to vector<256x64xf32>
    %13 = arith.addf %10, %12 : vector<256x64xf32>
    %cst_14 = arith.constant 1.250000e-01 : f32
    %14 = vector.broadcast %cst_14 : f32 to vector<16x64xf32>
    %15 = arith.mulf %8, %14 : vector<16x64xf32>
    %16 = vector.shape_cast %15 : vector<16x64xf32> to vector<2x8x64xf32>
    %17 = vector.shape_cast %13 : vector<256x64xf32> to vector<2x128x64xf32>
    "tpu.trace_start"() <{level = 10 : i32, message = "bqd,bkd->bqk"}> : () -> ()
    %cst_15 = arith.constant dense<0.000000e+00> : vector<2x8x128xf32>
    %18 = tpu.matmul %16, %17, %cst_15 {dimension_numbers = #tpu.dot_dimension_numbers<[2], [2], [1], [1], [0, 0, 0, 1, 1, 1], [0], [0]>} : vector<2x8x64xf32>, vector<2x128x64xf32>, vector<2x8x128xf32> -> vector<2x8x128xf32>
    "tpu.trace_stop"() : () -> ()
    %c0_16 = arith.constant 0 : index
    %c0_17 = arith.constant 0 : index
    %c0_18 = arith.constant 0 : index
    %19 = vector.load %arg3[%c0_16, %c0_17, %c0_18] : memref<2x1x128xf32, #tpu.memory_space<vmem>>, vector<2x1x128xf32>
    %20 = vector.broadcast %19 : vector<2x1x128xf32> to vector<2x8x128xf32>
    %21 = arith.addf %18, %20 : vector<2x8x128xf32>
    %c0_19 = arith.constant 0 : index
    %c0_20 = arith.constant 0 : index
    %c0_21 = arith.constant 0 : index
    %22 = vector.load %arg8[%c0_19, %c0_20, %c0_21] : memref<2x8x128xf32, #tpu.memory_space<vmem>>, vector<2x8x128xf32>
    tpu.vector_store %arg8[%c0_19, %c0_20, %c0_21], %21 {strides = array<i32>} : memref<2x8x128xf32, #tpu.memory_space<vmem>>, vector<2x8x128xf32>,
    return
  }
  func.func @transform_0(%arg0: i32) -> (i32, i32, i32) {
    %c0_i32 = arith.constant 0 : i32
    %c0_i32_0 = arith.constant 0 : i32
    %c0_i32_1 = arith.constant 0 : i32
    return %arg0, %c0_i32, %c0_i32_0 : i32, i32, i32
  }
  func.func @transform_1(%arg0: i32) -> (i32, i32, i32) {
    %c0_i32 = arith.constant 0 : i32
    %c0_i32_0 = arith.constant 0 : i32
    %c0_i32_1 = arith.constant 0 : i32
    return %arg0, %c0_i32, %c0_i32_0 : i32, i32, i32
  }
  func.func @transform_2(%arg0: i32) -> (i32, i32, i32) {
    %c0_i32 = arith.constant 0 : i32
    %c0_i32_0 = arith.constant 0 : i32
    %c0_i32_1 = arith.constant 0 : i32
    return %arg0, %c0_i32, %c0_i32_0 : i32, i32, i32
  }
  func.func @transform_3(%arg0: i32) -> (i32, i32) {
    %c0_i32 = arith.constant 0 : i32
    %c0_i32_0 = arith.constant 0 : i32
    %c0_i32_1 = arith.constant 0 : i32
    return %c0_i32, %c0_i32_0 : i32, i32
  }
  func.func @transform_4(%arg0: i32) -> (i32, i32) {
    %c0_i32 = arith.constant 0 : i32
    %c0_i32_0 = arith.constant 0 : i32
    %c0_i32_1 = arith.constant 0 : i32
    return %c0_i32, %c0_i32_0 : i32, i32
  }
  func.func @transform_5(%arg0: i32) -> (i32, i32) {
    %c0_i32 = arith.constant 0 : i32
    %c0_i32_0 = arith.constant 0 : i32
    %c0_i32_1 = arith.constant 0 : i32
    return %c0_i32, %c0_i32_0 : i32, i32
  }
  func.func @transform_6(%arg0: i32) -> (i32, i32) {
    %c0_i32 = arith.constant 0 : i32
    %c0_i32_0 = arith.constant 0 : i32
    %c0_i32_1 = arith.constant 0 : i32
    return %c0_i32, %c0_i32_0 : i32, i32
  }
  func.func @transform_7(%arg0: i32) -> (i32, i32, i32) {
    %c0_i32 = arith.constant 0 : i32
    %c0_i32_0 = arith.constant 0 : i32
    %c0_i32_1 = arith.constant 0 : i32
    return %arg0, %c0_i32, %c0_i32_0 : i32, i32, i32
  }
}

</mosaic_0001>

<bundles_post_ra>
// kernel: tpu_custom_call.1
= control target key start
LH: loop header
LB: loop body
LE: loop exit
PB: predicated region body
PF: predicated region fallthrough
CT: control target
= control target key end

     0   :  { %12 = vsyncpa [#allocation3], 0  ;;  %s2003_s0 = inlined_call_operand.vmem [shape: f32[4,8,64], index: 0, kind: input, shape index: {}]   ;;  %s2004_s1 = inlined_call_operand.vmem [shape: f32[4,128,64], index: 1, kind: input, shape index: {}]   ;;  %s2005_s2 = inlined_call_operand.vmem [shape: f32[4,1,128], index: 2, kind: input, shape index: {}]   ;;  %s2006_s3 = inlined_call_operand.vmem [shape: f32[64,64], index: 3, kind: input, shape index: {}]   ;;  %s2007_s4 = inlined_call_operand.vmem [shape: f32[1,64], index: 4, kind: input, shape index: {}]   ;;  %s2008_s5 = inlined_call_operand.vmem [shape: f32[64,64], index: 5, kind: input, shape index: {}]   ;;  %s2009_s6 = inlined_call_operand.vmem [shape: f32[1,64], index: 6, kind: input, shape index: {}]   ;;  %s2010_s7 = inlined_call_operand.hbm [shape: f32[4,8,128], index: 7, kind: output, shape index: {}]  }
   0x1   :  { %14 = vsyncpa [#allocation3 + $0x1], 0  ;;  %s1625_s24 = smov 0   ;;  %s1627_s25 = smov 0  }
   0x2   :  { %s1629_s26 = smov 0   ;;  %s1631_s27 = smov 0  }
   0x3 LB: > { %s1646_s28 = sadd.s32 4294967295, %s1578_s27   ;;  %s1148_s29 = sadd.s32 4294967294, %s1578_s27   ;;  %s1578_s27 = sphi %s1631_s27, %s2016_s27   ;;  %s1574_s26 = sphi %s1629_s26, %s2015_s26   ;;  %s1570_s25 = sphi %s1627_s25, %s2014_s25   ;;  %s1566_s24 = sphi %s1625_s24, %s2013_s24  }
   0x4   : > { %s1650_s30 = sadd.s32 1, %s1578_s27   ;;  %s189_s8 = sadd.s32 1, %s1574_s26 }
   0x5   : > { %s186_s9 = ssub.s32 %s1578_s27, %s1650_s30  ;;  %p199_p0 = scmp.ne.s32.totalorder %s1574_s26, %s1570_s25 }
   0x6   : > { %p187_p1 = scmp.eq.s32.totalorder %s186_s9, 0  ;;  %p200_p2 = scmp.eq.s32.totalorder %s1646_s28, 1 }
   0x7   : > { %p205_p3 = scmp.ne.s32.totalorder %s1570_s25, %s1566_s24  ;;  %p206_p4 = scmp.eq.s32.totalorder %s1148_s29, 1 }
   0x8   : > { %s1661_s10 = scalar_select %p187_p1, %s1574_s26, %s189_s8  }
   0x9   : > { %p1663_p5 = por %p200_p2, %p199_p0  ;;  %p1667_p6 = por %p206_p4, %p205_p3 }
   0xa   : > { %p1151_p7 = scmp.ge.s32.totalorder %s1578_s27, 1  ;;  %p263_p8 = scmp.lt.s32.totalorder %s1578_s27, 3 }
   0xc   : > { %p264_p9 = pnand %p1151_p7, %p263_p8 }
   0xd   : > { %s1153_s17 = sshll.u32 (!%p264_p9), %s1646_s28, 1  ;;  %s302_s19 = sand.u32 (!%p264_p9), 1, %s1570_s25  }
   0xe   : > { %267 = sbr.rel (%p264_p9) target bundleno = 563 (0x233), region = 48  ;;  %p306_p10 = scmp.lt.s32.totalorder (!%p264_p9), %s1153_s17, 3 }
   0xf   : > { %s1152_s29 = sshll.u32 (!%p264_p9), %s302_s19, 4  ;;  %s1237_s13 = sshll.u32 (!%p264_p9), %s1646_s28, 8 }
  0x10   : > { %s304_s8 = scalar_lea.vmem (!%p264_p9), [#allocation2], %s1152_s29  ;;  %s1963_s15 = scalar_lea.sflag (!%p264_p9), [#allocation3], %s302_s19 }
  0x11   : > { %s1582_s28 = smov (!%p264_p9), [#allocation2]  }
  0x13   : > { %v462_v0 = vld [vmem:[%s2008_s5 + $0x38] sm:$0xff]  ;;  %v461_v1 = vld [vmem:[%s2008_s5 + $0x30] sm:$0xff]  ;;  %v460_v2 = vld [vmem:[%s2008_s5 + $0x28] sm:$0xff]  ;;  %s2018_s17 = smov (!%p306_p10, %s1153_s17), 3  ;;  %vm373_vm0 = vcmask 523264   ;;  %v1580_v50 = vmov 0.0  }
  0x14   : > { %1341 = vmatprep.subr.mxu1 %v462_v0  ;;  %v365_v3 = vld [vmem:[%s2006_s3 + $0x38] sm:$0xff]  ;;  %v364_v4 = vld [vmem:[%s2006_s3 + $0x30] sm:$0xff]  ;;  %v459_v5 = vld [vmem:[%s2008_s5 + $0x20] sm:$0xff]  ;;  %s1236_s14 = sshll.u32 %s2018_s17, 7  ;;  %s1154_s18 = sshll.u32 %s2018_s17, 3  ;;  %vm1581_vm1 = vmmov 0  }
  0x15   : > { %1342 = vmatpush3.msra.mxu1 %v462_v0  ;;  %1322 = vmatprep.subr.mxu0 %v365_v3  ;;  %v363_v6 = vld [vmem:[%s2006_s3 + $0x28] sm:$0xff]  ;;  %v458_v7 = vld [vmem:[%s2008_s5 + $0x18] sm:$0xff]  ;;  %s1704_s20 = scalar_lea.vmem %s2004_s1, %s1236_s14  ;;  %v362_v9 = vld [vmem:[%s2006_s3 + $0x20] sm:$0xff]  ;;  %s309_s9 = scalar_lea.vmem %s2003_s0, %s1154_s18 }
  0x16   : > { %1343 = vmatprep.subr.mxu1 %v461_v1  ;;  %1323 = vmatpush3.msra.mxu0 %v365_v3  ;;  %v326_v8 = vld [vmem:[%s1704_s20] sm:$0xff]  ;;  %v457_v10 = vld [vmem:[%s2008_s5 + $0x10] sm:$0xff]  ;;  %v361_v11 = vld [vmem:[%s2006_s3 + $0x18] sm:$0xff]  ;;  %s321_s23 = scalar_lea.vmem %s2005_s2, %s2018_s17  ;;  %s1961_s17 = scalar_lea.hbm %s2010_s7, %s1237_s13 }
  0x17   : > { %1344 = vmatpush3.msra.mxu1 %v461_v1  ;;  %1324 = vmatprep.subr.mxu0 %v364_v4  ;;  %v456_v12 = vld [vmem:[%s2008_s5 + $0x8] sm:$0xff]  ;;  %v360_v13 = vld [vmem:[%s2006_s3 + $0x10] sm:$0xff]  ;;  %v455_v14 = vld [vmem:[%s2008_s5] sm:$0xff]  ;;  %s1522_s18 = sshll.u32 %s1582_s28, 4  ;;  %s1523_s18 = int_to_ptr.vmem [resolvable:$false] %s1522_s18 }
  0x18   : > { %1345 = vmatprep.subr.mxu1 %v460_v2  ;;  %1325 = vmatpush3.msra.mxu0 %v364_v4  ;;  %v359_v15 = vld [vmem:[%s2006_s3 + $0x8] sm:$0xff]  ;;  %v328_v17 = vld [vmem:[%s1704_s20 + $0x10] sm:$0xff]  ;;  %v358_v18 = vld [vmem:[%s2006_s3] sm:$0xff]  ;;  %s1524_s21 = scalar_lea.vmem %s1523_s18, 512 }
  0x19   : > { %1346 = vmatpush3.msra.mxu1 %v460_v2  ;;  %1326 = vmatprep.subr.mxu0 %v363_v6  ;;  %v327_v16 = vld [vmem:[%s1704_s20 + $0x8] sm:$0xff]  ;;  %v324_v19 = vld [vmem:[%s309_s9] sm:$0xff]  ;;  %v329_v20 = vld [vmem:[%s1704_s20 + $0x18] sm:$0xff] }
  0x1a   : > { %1347 = vmatprep.subr.mxu1 %v459_v5  ;;  %1357 = vmatprep.mubr.msk.f32.mxu1 %vm373_vm0, %v326_v8  ;;  %v325_v21 = vld [vmem:[%s309_s9 + $0x8] sm:$0xff]  ;;  %v330_v22 = vld [vmem:[%s1704_s20 + $0x20] sm:$0xff]  ;;  %v332_v24 = vld [vmem:[%s1704_s20 + $0x30] sm:$0xff]  ;;  %s1065_s9 = sshll.u32 %s304_s8, 4  ;;  %s1956_s9 = int_to_ptr.vmem [resolvable:$true] %s1065_s9 }
  0x1b   : > { %1348 = vmatpush3.msra.mxu1 %v459_v5  ;;  %1327 = vmatpush3.msra.mxu0 %v363_v6  ;;  %v331_v23 = vld [vmem:[%s1704_s20 + $0x28] sm:$0xff]  ;;  %v333_v25 = vld [vmem:[%s1704_s20 + $0x38] sm:$0xff]  ;;  %v334_v26 = vld [vmem:[%s1704_s20 + $0x40] sm:$0xff]  ;;  %s1518_s16 = scalar_lea.vmem %s1956_s9, 256  ;;  %p1525_p0 = scmp.lt.s32.totalorder %s1956_s9, %s1523_s18 }
  0x1c   : > { %1349 = vmatprep.subr.mxu1 %v458_v7  ;;  %1328 = vmatprep.subr.mxu0 %v362_v9  ;;  %v335_v27 = vld [vmem:[%s1704_s20 + $0x48] sm:$0xff]  ;;  %v336_v28 = vld [vmem:[%s1704_s20 + $0x50] sm:$0xff]  ;;  %v337_v29 = vld [vmem:[%s1704_s20 + $0x58] sm:$0xff]  ;;  %p1519_p11 = scmp.ne.s32.totalorder %s1956_s9, %s1518_s16  ;;  %p1526_p1 = scmp.lt.s32.totalorder %s1524_s21, %s1518_s16 }
  0x1d   : > { %1350 = vmatpush3.msra.mxu1 %v458_v7  ;;  %1329 = vmatpush3.msra.mxu0 %v362_v9  ;;  %v338_v30 = vld [vmem:[%s1704_s20 + $0x60] sm:$0xff]  ;;  %v339_v31 = vld [vmem:[%s1704_s20 + $0x68] sm:$0xff]  ;;  %v340_v32 = vld [vmem:[%s1704_s20 + $0x70] sm:$0xff] }
  0x1e   : > { %1351 = vmatprep.subr.mxu1 %v457_v10  ;;  %1330 = vmatprep.subr.mxu0 %v361_v11  ;;  %v341_v33 = vld [vmem:[%s1704_s20 + $0x78] sm:$0xff]  ;;  %v342_v34 = vld [vmem:[%s1704_s20 + $0x80] sm:$0xff]  ;;  %v343_v35 = vld [vmem:[%s1704_s20 + $0x88] sm:$0xff]  ;;  %p1520_p12 = pnand %p1519_p11, %p1663_p5  ;;  %p1527_p2 = por %p1526_p1, %p1525_p0 }
  0x1f   : > { %1352 = vmatpush3.msra.mxu1 %v457_v10  ;;  %1331 = vmatpush3.msra.mxu0 %v361_v11  ;;  %v344_v36 = vld [vmem:[%s1704_s20 + $0x90] sm:$0xff]  ;;  %v345_v37 = vld [vmem:[%s1704_s20 + $0x98] sm:$0xff]  ;;  %v346_v38 = vld [vmem:[%s1704_s20 + $0xa0] sm:$0xff] }
  0x20   : > { %1353 = vmatprep.subr.mxu1 %v456_v12  ;;  %1332 = vmatprep.subr.mxu0 %v360_v13  ;;  %v347_v39 = vld [vmem:[%s1704_s20 + $0xa8] sm:$0xff]  ;;  %v348_v40 = vld [vmem:[%s1704_s20 + $0xb0] sm:$0xff]  ;;  %v349_v41 = vld [vmem:[%s1704_s20 + $0xb8] sm:$0xff]  ;;  %p1521_p13 = pneg %p1520_p12 }
  0x21   : > { %1354 = vmatpush3.msra.mxu1 %v456_v12  ;;  %1333 = vmatpush3.msra.mxu0 %v360_v13  ;;  %v350_v42 = vld [vmem:[%s1704_s20 + $0xc0] sm:$0xff]  ;;  %v351_v43 = vld [vmem:[%s1704_s20 + $0xc8] sm:$0xff]  ;;  %v352_v44 = vld [vmem:[%s1704_s20 + $0xd0] sm:$0xff] }
  0x22   : > { %1355 = vmatprep.subr.mxu1 %v455_v14  ;;  %1334 = vmatprep.subr.mxu0 %v359_v15  ;;  %v353_v45 = vld [vmem:[%s1704_s20 + $0xd8] sm:$0xff]  ;;  %v354_v46 = vld [vmem:[%s1704_s20 + $0xe0] sm:$0xff]  ;;  %v355_v47 = vld [vmem:[%s1704_s20 + $0xe8] sm:$0xff]  ;;  %p1528_p3 = pnand %p1527_p2, %p1521_p13 }
  0x23   : > { %1356 = vmatpush3.msra.mxu1 %v455_v14  ;;  %1335 = vmatpush3.msra.mxu0 %v359_v15  ;;  %v356_v48 = vld [vmem:[%s1704_s20 + $0xf0] sm:$0xff]  ;;  %v357_v49 = vld [vmem:[%s1704_s20 + $0xf8] sm:$0xff]  ;;  %v1819_v1 = vld [vmem:[%s2009_s6] ss:$0 sm:$0xff] }
  0x24   : > { %1358 = vmatmul.mubr.msk.f32.vlgmr.msra.gmra.mxu1 %vm373_vm0, %v327_v16  ;;  %1336 = vmatprep.subr.mxu0 %v358_v18 }
  0x25   : > { %1360 = vmatprep.mubr.msk.f32.mxu1 %vm373_vm0, %v328_v17  ;;  %1337 = vmatpush3.msra.mxu0 %v358_v18 }
  0x26   : > { %1338 = vmatprep.mubr.msk.f32.mxu0 %vm373_vm0, %v324_v19  ;;  %1405 = vmatprep.subr.mxu0 %v1580_v50 }
  0x27   : > { %1339 = vmatmul.mubr.msk.f32.vlgmr.msra.gmra.mxu0 %vm373_vm0, %v325_v21  ;;  %1440 = vmatprep.subr.mxu1 %v1580_v50 }
  0x28   : > { %1361 = vmatmul.mubr.msk.f32.gmra.mxu1 %vm373_vm0, %v329_v20  ;;  %1437 = vmatprep.mubr.msk.f32.mxu0 %vm1581_vm1, %v1580_v50 }
  0x29   : > { %1363 = vmatprep.mubr.msk.f32.mxu1 %vm373_vm0, %v330_v22 }
  0x2c   : > { %1364 = vmatmul.mubr.msk.f32.gmra.mxu1 %vm373_vm0, %v331_v23 }
  0x2d   : > { %1366 = vmatprep.mubr.msk.f32.mxu1 %vm373_vm0, %v332_v24 }
  0x30   : > { %1367 = vmatmul.mubr.msk.f32.gmra.mxu1 %vm373_vm0, %v333_v25 }
  0x31   : > { %1369 = vmatprep.mubr.msk.f32.mxu1 %vm373_vm0, %v334_v26 }
  0x34   : > { %1370 = vmatmul.mubr.msk.f32.gmra.mxu1 %vm373_vm0, %v335_v27 }
  0x35   : > { %1372 = vmatprep.mubr.msk.f32.mxu1 %vm373_vm0, %v336_v28 }
  0x38   : > { %1373 = vmatmul.mubr.msk.f32.gmra.mxu1 %vm373_vm0, %v337_v29 }
  0x39   : > { %1375 = vmatprep.mubr.msk.f32.mxu1 %vm373_vm0, %v338_v30 }
  0x3c   : > { %1376 = vmatmul.mubr.msk.f32.gmra.mxu1 %vm373_vm0, %v339_v31 }
  0x3d   : > { %1378 = vmatprep.mubr.msk.f32.mxu1 %vm373_vm0, %v340_v32 }
  0x40   : > { %1379 = vmatmul.mubr.msk.f32.gmra.mxu1 %vm373_vm0, %v341_v33 }
  0x41   : > { %1381 = vmatprep.mubr.msk.f32.mxu1 %vm373_vm0, %v342_v34 }
  0x44   : > { %1382 = vmatmul.mubr.msk.f32.gmra.mxu1 %vm373_vm0, %v343_v35 }
  0x45   : > { %1384 = vmatprep.mubr.msk.f32.mxu1 %vm373_vm0, %v344_v36 }
  0x48   : > { %1385 = vmatmul.mubr.msk.f32.gmra.mxu1 %vm373_vm0, %v345_v37 }
  0x49   : > { %1387 = vmatprep.mubr.msk.f32.mxu1 %vm373_vm0, %v346_v38 }
  0x4c   : > { %1388 = vmatmul.mubr.msk.f32.gmra.mxu1 %vm373_vm0, %v347_v39 }
  0x4d   : > { %1390 = vmatprep.mubr.msk.f32.mxu1 %vm373_vm0, %v348_v40 }
  0x50   : > { %1391 = vmatmul.mubr.msk.f32.gmra.mxu1 %vm373_vm0, %v349_v41 }
  0x51   : > { %1393 = vmatprep.mubr.msk.f32.mxu1 %vm373_vm0, %v350_v42 }
  0x54   : > { %1394 = vmatmul.mubr.msk.f32.gmra.mxu1 %vm373_vm0, %v351_v43 }
  0x55   : > { %1396 = vmatprep.mubr.msk.f32.mxu1 %vm373_vm0, %v352_v44 }
  0x58   : > { %1397 = vmatmul.mubr.msk.f32.gmra.mxu1 %vm373_vm0, %v353_v45  ;;  %v1159_v45 = vld [vmem:[%s2007_s4] ss:$0 sm:$0xff] }
  0x59   : > { %1399 = vmatprep.mubr.msk.f32.mxu1 %vm373_vm0, %v354_v46 }
  0x5c   : > { %1400 = vmatmul.mubr.msk.f32.gmra.mxu1 %vm373_vm0, %v355_v47 }
  0x5d   : > { %1402 = vmatprep.mubr.msk.f32.mxu1 %vm373_vm0, %v356_v48 }
  0x60   : > { %1403 = vmatmul.mubr.msk.f32.gmra.mxu1 %vm373_vm0, %v357_v49 }
  0x61   : > { %1472 = vmatprep.mubr.msk.f32.mxu1 %vm1581_vm1, %v1580_v50 }
  0xe4   : > { %v1804_v51 = vpop.f32.mrf.mxu1 }
  0xe5   : > { %v638_v47 = vadd.f32 %v1804_v51, %v1819_v1 }
  0xe6   : > { %v1806_v52 = vpop.f32.mrf.mxu1 }
  0xe7   : > { %v1340_v42 = vpop.f32.mrf.mxu0 }
  0xe8   : > { %v1808_v53 = vpop.f32.mrf.mxu1 }
  0xe9   : > { %v648_v40 = vadd.f32 %v1808_v53, %v1819_v1  ;;  %v446_v46 = vpop.f32.mrf.mxu0  ;;  %v633_v53 = vadd.f32 %v1819_v1, %v1806_v52 }
  0xea   : > { %v1810_v54 = vpop.f32.mrf.mxu1  ;;  %v447_v49 = vadd.f32 %v1159_v45, %v446_v46 }
  0xeb   : > { %v643_v43 = vadd.f32 %v1819_v1, %v1810_v54 }
  0xec   : > { %v1812_v55 = vpop.f32.mrf.mxu1 }
  0xed   : > { %v658_v36 = vadd.f32 %v1812_v55, %v1819_v1  ;;  %v791_v55 = vmul.f32 0.125, %v447_v49 }
  0xee   : > { %v1814_v56 = vpop.f32.mrf.mxu1 }
  0xef   : > { %v653_v38 = vadd.f32 %v1819_v1, %v1814_v56 }
  0xf0   : > { %v1368_v57 = vpop.f32.mrf.mxu1 }
  0xf1   : > { %v668_v31 = vadd.f32 %v1368_v57, %v1819_v1 }
  0xf2   : > { %v662_v58 = vpop.f32.mrf.mxu1 }
  0xf3   : > { %v663_v34 = vadd.f32 %v1819_v1, %v662_v58  ;;  %v452_v58 = vadd.f32 %v1340_v42, %v1159_v45 }
  0xf4   : > { %v1371_v59 = vpop.f32.mrf.mxu1 }
  0xf5   : > { %v678_v25 = vadd.f32 %v1371_v59, %v1819_v1  ;;  %v792_v59 = vmul.f32 0.125, %v452_v58 }
  0xf6   : > { %v672_v60 = vpop.f32.mrf.mxu1 }
  0xf7   : > { %v673_v28 = vadd.f32 %v1819_v1, %v672_v60  ;;  %v1195_v60 = vld [vmem:[%s321_s23] ss:$0 sm:$0xff] }
  0xf8   : > { %v1374_v61 = vpop.f32.mrf.mxu1 }
  0xf9   : > { %v688_v19 = vadd.f32 %v1374_v61, %v1819_v1 }
  0xfa   : > { %v682_v62 = vpop.f32.mrf.mxu1 }
  0xfb   : > { %v683_v22 = vadd.f32 %v1819_v1, %v682_v62 }
  0xfc   : > { %v1377_v63 = vpop.f32.mrf.mxu1 }
  0xfd   : > { %v698_v11 = vadd.f32 %v1377_v63, %v1819_v1 }
  0xfe   : > { %v692_v0 = vpop.f32.mrf.mxu1 }
  0xff   : > { %v693_v16 = vadd.f32 %v1819_v1, %v692_v0 }
 0x100   : > { %v1380_v2 = vpop.f32.mrf.mxu1 }
 0x101   : > { %v708_v3 = vadd.f32 %v1380_v2, %v1819_v1 }
 0x102   : > { %v702_v4 = vpop.f32.mrf.mxu1 }
 0x103   : > { %1406 = vmatpush3.xpose.msk.msra.mxu0 %vm373_vm0, %v708_v3  ;;  %v703_v6 = vadd.f32 %v1819_v1, %v702_v4 }
 0x104   : > { %v1383_v5 = vpop.f32.mrf.mxu1  ;;  %1407 = vmatprep.subr.mxu0 %v1580_v50 }
 0x105   : > { %v1826_v7 = vadd.f32 %v1383_v5, %v1819_v1 }
 0x106   : > { %v712_v8 = vpop.f32.mrf.mxu1 }
 0x107   : > { %v1829_v9 = vadd.f32 %v1819_v1, %v712_v8  ;;  %1408 = vmatpush3.xpose.msk.msra.mxu0 %vm373_vm0, %v703_v6 }
 0x108   : > { %v1386_v10 = vpop.f32.mrf.mxu1  ;;  %1409 = vmatprep.subr.mxu0 %v1580_v50 }
 0x109   : > { %v1835_v12 = vadd.f32 %v1386_v10, %v1819_v1 }
 0x10a   : > { %v722_v13 = vpop.f32.mrf.mxu1 }
 0x10b   : > { %v1838_v14 = vadd.f32 %v1819_v1, %v722_v13  ;;  %1410 = vmatpush3.xpose.msk.msra.mxu0 %vm373_vm0, %v698_v11 }
 0x10c   : > { %v1841_v15 = vpop.f32.mrf.mxu1  ;;  %1411 = vmatprep.subr.mxu0 %v1580_v50 }
 0x10d   : > { %v738_v56 = vadd.f32 %v1841_v15, %v1819_v1 }
 0x10e   : > { %v1845_v17 = vpop.f32.mrf.mxu1 }
 0x10f   : > { %1412 = vmatpush3.xpose.msk.msra.mxu0 %vm373_vm0, %v693_v16  ;;  %v733_v57 = vadd.f32 %v1819_v1, %v1845_v17 }
 0x110   : > { %v1848_v18 = vpop.f32.mrf.mxu1  ;;  %1413 = vmatprep.subr.mxu0 %v1580_v50 }
 0x111   : > { %v748_v51 = vadd.f32 %v1848_v18, %v1819_v1 }
 0x112   : > { %v1852_v20 = vpop.f32.mrf.mxu1 }
 0x113   : > { %1414 = vmatpush3.xpose.msk.msra.mxu0 %vm373_vm0, %v688_v19  ;;  %v743_v52 = vadd.f32 %v1819_v1, %v1852_v20 }
 0x114   : > { %v1395_v21 = vpop.f32.mrf.mxu1  ;;  %1415 = vmatprep.subr.mxu0 %v1580_v50 }
 0x115   : > { %v758_v48 = vadd.f32 %v1395_v21, %v1819_v1 }
 0x116   : > { %v752_v23 = vpop.f32.mrf.mxu1 }
 0x117   : > { %1416 = vmatpush3.xpose.msk.msra.mxu0 %vm373_vm0, %v683_v22  ;;  %v753_v54 = vadd.f32 %v1819_v1, %v752_v23 }
 0x118   : > { %v1398_v24 = vpop.f32.mrf.mxu1  ;;  %1417 = vmatprep.subr.mxu0 %v1580_v50 }
 0x119   : > { %v768_v41 = vadd.f32 %v1398_v24, %v1819_v1 }
 0x11a   : > { %v762_v26 = vpop.f32.mrf.mxu1 }
 0x11b   : > { %1418 = vmatpush3.xpose.msk.msra.mxu0 %vm373_vm0, %v678_v25  ;;  %v763_v44 = vadd.f32 %v1819_v1, %v762_v26 }
 0x11c   : > { %v1401_v27 = vpop.f32.mrf.mxu1  ;;  %1419 = vmatprep.subr.mxu0 %v1580_v50 }
 0x11d   : > { %v778_v37 = vadd.f32 %v1401_v27, %v1819_v1 }
 0x11e   : > { %v772_v29 = vpop.f32.mrf.mxu1 }
 0x11f   : > { %1420 = vmatpush3.xpose.msk.msra.mxu0 %vm373_vm0, %v673_v28  ;;  %v773_v39 = vadd.f32 %v1819_v1, %v772_v29 }
 0x120   : > { %v1404_v30 = vpop.f32.mrf.mxu1  ;;  %1421 = vmatprep.subr.mxu0 %v1580_v50 }
 0x121   : > { %v788_v32 = vadd.f32 %v1404_v30, %v1819_v1 }
 0x122   : > { %v782_v33 = vpop.f32.mrf.mxu1 }
 0x123   : > { %1422 = vmatpush3.xpose.msk.msra.mxu0 %vm373_vm0, %v668_v31  ;;  %1441 = vmatpush3.xpose.msk.msra.mxu1 %vm373_vm0, %v788_v32  ;;  %v783_v35 = vadd.f32 %v1819_v1, %v782_v33 }
 0x124   : > { %1423 = vmatprep.subr.mxu0 %v1580_v50  ;;  %1442 = vmatprep.subr.mxu1 %v1580_v50 }
 0x127   : > { %1424 = vmatpush3.xpose.msk.msra.mxu0 %vm373_vm0, %v663_v34  ;;  %1443 = vmatpush3.xpose.msk.msra.mxu1 %vm373_vm0, %v783_v35 }
 0x128   : > { %1425 = vmatprep.subr.mxu0 %v1580_v50  ;;  %1444 = vmatprep.subr.mxu1 %v1580_v50 }
 0x12b   : > { %1426 = vmatpush3.xpose.msk.msra.mxu0 %vm373_vm0, %v658_v36  ;;  %1445 = vmatpush3.xpose.msk.msra.mxu1 %vm373_vm0, %v778_v37 }
 0x12c   : > { %1427 = vmatprep.subr.mxu0 %v1580_v50  ;;  %1446 = vmatprep.subr.mxu1 %v1580_v50 }
 0x12f   : > { %1428 = vmatpush3.xpose.msk.msra.mxu0 %vm373_vm0, %v653_v38  ;;  %1447 = vmatpush3.xpose.msk.msra.mxu1 %vm373_vm0, %v773_v39 }
 0x130   : > { %1429 = vmatprep.subr.mxu0 %v1580_v50  ;;  %1448 = vmatprep.subr.mxu1 %v1580_v50 }
 0x133   : > { %1430 = vmatpush3.xpose.msk.msra.mxu0 %vm373_vm0, %v648_v40  ;;  %1449 = vmatpush3.xpose.msk.msra.mxu1 %vm373_vm0, %v768_v41 }
 0x134   : > { %1431 = vmatprep.subr.mxu0 %v1580_v50  ;;  %1450 = vmatprep.subr.mxu1 %v1580_v50 }
 0x137   : > { %1432 = vmatpush3.xpose.msk.msra.mxu0 %vm373_vm0, %v643_v43  ;;  %1451 = vmatpush3.xpose.msk.msra.mxu1 %vm373_vm0, %v763_v44 }
 0x138   : > { %1433 = vmatprep.subr.mxu0 %v1580_v50  ;;  %1452 = vmatprep.subr.mxu1 %v1580_v50 }
 0x13b   : > { %1434 = vmatpush3.xpose.msk.msra.mxu0 %vm373_vm0, %v638_v47  ;;  %1453 = vmatpush3.xpose.msk.msra.mxu1 %vm373_vm0, %v758_v48 }
 0x13c   : > { %1435 = vmatprep.subr.mxu0 %v1580_v50  ;;  %1454 = vmatprep.subr.mxu1 %v1580_v50 }
 0x13f   : > { %1436 = vmatpush3.xpose.msk.msra.mxu0 %vm373_vm0, %v633_v53  ;;  %1455 = vmatpush3.xpose.msk.msra.mxu1 %vm373_vm0, %v753_v54 }
 0x140   : > { %1456 = vmatprep.subr.mxu1 %v1580_v50 }
 0x142   : > { %1438 = vmatmul.mubr.msk.f32.vlgmr.msra.gmra.mxu0 %vm373_vm0, %v791_v55 }
 0x143   : > { %1457 = vmatpush3.xpose.msk.msra.mxu1 %vm373_vm0, %v748_v51 }
 0x144   : > { %1458 = vmatprep.subr.mxu1 %v1580_v50 }
 0x147   : > { %1459 = vmatpush3.xpose.msk.msra.mxu1 %vm373_vm0, %v743_v52 }
 0x148   : > { %1460 = vmatprep.subr.mxu1 %v1580_v50 }
 0x14b   : > { %1461 = vmatpush3.xpose.msk.msra.mxu1 %vm373_vm0, %v738_v56 }
 0x14c   : > { %1462 = vmatprep.subr.mxu1 %v1580_v50 }
 0x14f   : > { %1463 = vmatpush3.xpose.msk.msra.mxu1 %vm373_vm0, %v733_v57 }
 0x150   : > { %1464 = vmatprep.subr.mxu1 %v1580_v50 }
 0x153   : > { %1465 = vmatpush3.xpose.msk.msra.mxu1 %vm373_vm0, %v1835_v12 }
 0x154   : > { %1466 = vmatprep.subr.mxu1 %v1580_v50 }
 0x157   : > { %1467 = vmatpush3.xpose.msk.msra.mxu1 %vm373_vm0, %v1838_v14 }
 0x158   : > { %1468 = vmatprep.subr.mxu1 %v1580_v50 }
 0x15b   : > { %1469 = vmatpush3.xpose.msk.msra.mxu1 %vm373_vm0, %v1826_v7 }
 0x15c   : > { %1470 = vmatprep.subr.mxu1 %v1580_v50  ;;  %v1196_v50 = vld [vmem:[%s321_s23 + $0x1] ss:$0 sm:$0xff] }
 0x15f   : > { %1471 = vmatpush3.xpose.msk.msra.mxu1 %vm373_vm0, %v1829_v9 }
 0x162   : > { %1473 = vmatmul.mubr.msk.f32.vlgmr.msra.gmra.mxu1 %vm373_vm0, %v792_v59 }
 0x202   : > { %v924_v61 = vpop.f32.mrf.mxu0 }
 0x203   : > { %v925_v62 = vadd.f32 %v1195_v60, %v924_v61 }
 0x204   : > { %v1439_v63 = vpop.f32.mrf.mxu0 }
 0x205   : > { %1049 = vst [vmem:[%s304_s8] sm:$0xff] %v925_v62 }
 0x222   : > { %v1045_v0 = vpop.f32.mrf.mxu1 }
 0x223   : > { %v1046_v1 = vadd.f32 %v1196_v50, %v1045_v0 }
 0x224   : > { %v1474_v2 = vpop.f32.mrf.mxu1 }
 0x225   : > { %1050 = vst [vmem:[%s304_s8 + $0x8] sm:$0xff] %v1046_v1 }
 0x226   : > { %1531 = shalt.err (!%p1528_p3)
}
 0x227   : > { %s1532_s19 = scalar_lea.hbm %s1961_s17, 256  ;;  %s1536_s29 = scalar_lea.hbm %s2010_s7, 512 }
 0x228   : > { %p1533_p4 = scmp.ne.s32.totalorder %s1961_s17, %s1532_s19  ;;  %p1537_p9 = scmp.lt.s32.totalorder %s1961_s17, %s2010_s7 }
 0x229   : > { %p1538_p10 = scmp.lt.s32.totalorder %s1536_s29, %s1532_s19 }
 0x22a   : > { %p1534_p7 = pnand %p1533_p4, %p1663_p5 }
 0x22b   : > { %p1539_p11 = por %p1538_p10, %p1537_p9 }
 0x22c   : > { %p1535_p8 = pneg %p1534_p7 }
 0x22e   : > { %p1540_p12 = pnand %p1539_p11, %p1535_p8 }
 0x230   : > { %1543 = shalt.err (!%p1540_p12)
}
 0x231   : > { %s1583_s14 = smov 128   ;;  %s1584_s20 = smov 8  }
 0x232   : > { %1475 = dma.vmem_to_hbm [thread:$0]  (%p1663_p5), %s1956_s9, 256, %s1961_s17, %s1963_s15, %s1583_s14, %s1583_s14, %s1584_s20  }
 0x233 PF: > { %p1481_p13 = scmp.ge.s32.totalorder %s1578_s27, 2  ;;  %s1080_s16 = sand.u32 1, %s1566_s24  }
 0x234   : > { %s1081_s28 = scalar_lea.sflag [#allocation3], %s1080_s16 }
 0x235   : > { %p1478_p0 = pnand %p1481_p13, %p1667_p6 }
 0x237   : > { %p1479_p1 = pneg %p1478_p0 }
 0x239   : > { %1561 = dma.done.wait (%p1479_p1), %s1081_s28, 256  }
 0x23a   : > { %1563 = vsyncadd (%p1479_p1), %s1081_s28, 4294967040  ;;  %p17_p2 = scmp.ge.s32.totalorder %s1650_s30, 4   ;;  %s2013_s24 = smov %s1570_s25 }
 0x23b   : > { %s2014_s25 = smov %s1574_s26  ;;  %s2015_s26 = smov %s1661_s10 }
 0x23c   : > { %s2016_s27 = smov %s1650_s30  ;;  %19 = sbr.rel (!%p17_p2) target bundleno = 3 (0x3), region = 89 }
 0x241   :  { %1086 = vsyncpa [#allocation3], 1 }
 0x242   :  { %1088 = vsyncpa [#allocation3 + $0x1], 1 }

</bundles_post_ra>
